<compile_context>
chip_gen: v7x
topology: tpu7x:2x2x1
jax: 0.10.0
libtpu: 0.0.40
codegen_flags: <defaults>
</compile_context>

<pallas_src>
import functools
import math

import numpy as np
import jax
import jax.numpy as jnp
from jax.experimental import pallas as pl
from jax.experimental.pallas import tpu as pltpu


@functools.lru_cache(maxsize=None)
def make_relative_sinusoidal_embeddings(window_size: int, overlap: int = 0) -> np.ndarray:
    """Deterministic host-side reproduction of the torch __init__ parameter.

    Cached so the table is built once (like the torch module's __init__),
    not per forward call.
    """
    expanded_window = int(window_size * (overlap + 1))
    C = 2 * window_size - 1
    D = 2 * expanded_window - 1

    B = np.zeros((C, D), dtype=np.float32)
    positions = np.arange(C, dtype=np.float32)[:, None]                        # (C, 1)
    divisor = np.exp(np.arange(0, D, 2, dtype=np.float32) * (-math.log(10000.0) / D))
    angles = positions * divisor                                               # (C, ceil(D/2))
    B[:, 0::2] = np.sin(angles)
    if B.shape[0] % 2 == 0 and B.shape[1] % 2 == 0:
        # C and D are always odd for this module; branch kept only for fidelity.
        B[:, 1::2] = np.cos(angles)
    else:
        B[:, 1::2] = np.cos(angles[:, :-1])

    # Relative index grids (torch .int() truncates toward zero, same as astype).
    xrows = np.arange(1, window_size + 1, 1.0 / window_size, dtype=np.float32)
    xrows = xrows[: window_size * window_size]
    xcols = np.arange(1, expanded_window + 1, 1.0 / expanded_window, dtype=np.float32)
    xcols = xcols[: expanded_window * expanded_window]
    x_idx = (xcols[None, :] - xrows[:, None]).astype(np.int64)                 # (w^2, ew^2)

    yrows = np.concatenate([np.arange(1, window_size + 1)] * window_size)
    ycols = np.concatenate([np.arange(1, expanded_window + 1)] * expanded_window)
    y_idx = (ycols[None, :] - yrows[:, None]).astype(np.int64)                 # (w^2, ew^2)

    # Negative indices wrap identically in numpy and torch -> relative-position trick.
    emb = B[x_idx, y_idx].astype(np.float32)                                   # (w^2, ew^2)
    return emb


def _add_emb_kernel(x_ref, emb_ref, o_ref):
    # x_ref/o_ref: (TR, TL) block; emb_ref: (1, TL) block.
    # Single streaming vadd per vreg; jnp broadcasting handles the (1, TL) row.
    o_ref[...] = x_ref[...] + emb_ref[...]


def _largest_divisor_tile(dim: int, unit: int, max_tile: int) -> int:
    """Largest t <= max_tile with t % unit == 0 and dim % t == 0; falls back to dim."""
    if dim % unit != 0:
        return dim
    t = (min(dim, max_tile) // unit) * unit
    while t >= unit:
        if dim % t == 0:
            return t
        t -= unit
    return dim


def relative_sinusoidal_embeddings_forward(
    x: jax.Array, emb: jax.Array, *, target_block_bytes: int = 2 << 20
) -> jax.Array:
    """x: (B, H, N, M); emb: (N, M). Returns x + emb (broadcast over B, H)."""
    Bb, Hh, N, M = x.shape
    assert emb.shape == (N, M), (emb.shape, (N, M))

    R = Bb * Hh
    L = N * M
    itemsize = jnp.dtype(x.dtype).itemsize

    # Lane-dense 2-D view: rows = (batch*heads), lanes = N*M (large multiple of 128).
    x2 = x.reshape(R, L)
    emb2 = emb.reshape(1, L).astype(x.dtype)

    # Row tile: multiple of 8 sublanes, sized toward ~target_block_bytes per buffer.
    row_budget = max(8, target_block_bytes // max(1, L * itemsize))
    TR = _largest_divisor_tile(R, 8, row_budget)

    # Lane tile: keep full L unless (a) there would be only one grid step
    # (give v7x's two TensorCores something to shard) or (b) the block is too big.
    TL = L
    if (R // TR) == 1 and L % 256 == 0:
        TL = _largest_divisor_tile(L, 128, L // 2)
    max_block_bytes = 4 << 20  # keep 2x-in + 2x-out double-buffering under scoped VMEM
    if TR * TL * itemsize > max_block_bytes and L % 128 == 0:
        TL = _largest_divisor_tile(L, 128, max(128, max_block_bytes // (TR * itemsize)))

    grid = (R // TR, L // TL)

    grid_spec = pl.GridSpec(
        grid=grid,
        in_specs=[
            pl.BlockSpec((TR, TL), lambda i, j: (i, j)),
            # Constant along the row axis -> table stays resident in VMEM across rows.
            pl.BlockSpec((1, TL), lambda i, j: (0, j)),
        ],
        out_specs=pl.BlockSpec((TR, TL), lambda i, j: (i, j)),
    )

    out2 = pl.pallas_call(
        _add_emb_kernel,
        out_shape=jax.ShapeDtypeStruct((R, L), x.dtype),
        grid_spec=grid_spec,
        compiler_params=pltpu.CompilerParams(
            dimension_semantics=("parallel", "parallel"),
        ),
        # TODO(synk): add input_output_aliases={0: 0} when the caller donates x
        # (saves one (B,H,N,M) HBM buffer); omitted here since the demo reuses x.
    )(x2, emb2)

    return out2.reshape(Bb, Hh, N, M)


if __name__ == "__main__":
    window_size = 8
    overlap = 0
    N = window_size * window_size                       # 64
    M = int(window_size * (overlap + 1)) ** 2           # 64

    emb_np = make_relative_sinusoidal_embeddings(window_size, overlap)
    emb = jnp.asarray(emb_np)                           # (64, 64) float32

    key = jax.random.PRNGKey(0)
    batch, heads = 2, 4
    x = jax.random.normal(key, (batch, heads, N, M), dtype=jnp.float32)

    out = relative_sinusoidal_embeddings_forward(x, emb)
    out = jax.block_until_ready(out)

    # correctness check against plain-JAX reference
    ref = x + emb[None, None, :, :]
    np.testing.assert_allclose(np.asarray(out), np.asarray(ref), rtol=1e-6, atol=1e-6)

    print("KERNEL_OK")
</pallas_src>

<mosaic_0001>
module attributes {stable_mosaic.version = 11 : i64} {
  func.func @_add_emb_kernel(%arg0: i32, %arg1: i32, %arg2: memref<8x2048xf32, #tpu.memory_space<vmem>>, %arg3: memref<1x2048xf32, #tpu.memory_space<vmem>>, %arg4: memref<8x2048xf32, #tpu.memory_space<vmem>>) attributes {dimension_semantics = [#tpu.dimension_semantics<parallel>, #tpu.dimension_semantics<parallel>], iteration_bounds = array<i64: 1, 2>, scalar_prefetch = 0 : i64, scratch_operands = 0 : i64, tpu.core_type = #tpu.core_type<tc>, window_params = [{transform_indices = @transform_0, window_bounds = array<i64: 8, 2048>}, {transform_indices = @transform_1, window_bounds = array<i64: 1, 2048>}, {transform_indices = @transform_2, window_bounds = array<i64: 8, 2048>}]} {
    %c0 = arith.constant 0 : index
    %c0_0 = arith.constant 0 : index
    %0 = vector.load %arg2[%c0, %c0_0] : memref<8x2048xf32, #tpu.memory_space<vmem>>, vector<8x2048xf32>
    %c0_1 = arith.constant 0 : index
    %c0_2 = arith.constant 0 : index
    %1 = vector.load %arg3[%c0_1, %c0_2] : memref<1x2048xf32, #tpu.memory_space<vmem>>, vector<1x2048xf32>
    %2 = vector.broadcast %1 : vector<1x2048xf32> to vector<8x2048xf32>
    %3 = arith.addf %0, %2 : vector<8x2048xf32>
    %c0_3 = arith.constant 0 : index
    %c0_4 = arith.constant 0 : index
    %4 = vector.load %arg4[%c0_3, %c0_4] : memref<8x2048xf32, #tpu.memory_space<vmem>>, vector<8x2048xf32>
    tpu.vector_store %arg4[%c0_3, %c0_4], %3 {strides = array<i32>} : memref<8x2048xf32, #tpu.memory_space<vmem>>, vector<8x2048xf32>,
    return
  }
  func.func @transform_0(%arg0: i32, %arg1: i32) -> (i32, i32) {
    %c0_i32 = arith.constant 0 : i32
    return %arg0, %arg1 : i32, i32
  }
  func.func @transform_1(%arg0: i32, %arg1: i32) -> (i32, i32) {
    %c0_i32 = arith.constant 0 : i32
    %c0_i32_0 = arith.constant 0 : i32
    return %c0_i32, %arg1 : i32, i32
  }
  func.func @transform_2(%arg0: i32, %arg1: i32) -> (i32, i32) {
    %c0_i32 = arith.constant 0 : i32
    return %arg0, %arg1 : i32, i32
  }
}

</mosaic_0001>

<bundles_post_ra>
// kernel: tpu_custom_call.1
= control target key start
LH: loop header
LB: loop body
LE: loop exit
PB: predicated region body
PF: predicated region fallthrough
CT: control target
= control target key end

     0   :  { %7 = vsyncpa [#allocation3], 0  ;;  %s990_s0 = inlined_call_operand.hbm [shape: f32[8,4096], index: 0, kind: input, shape index: {}]   ;;  %s991_s1 = inlined_call_operand.hbm [shape: f32[1,4096], index: 1, kind: input, shape index: {}]   ;;  %s992_s2 = inlined_call_operand.hbm [shape: f32[8,4096], index: 2, kind: output, shape index: {}]  }
   0x1   :  { %9 = vsyncpa [#allocation3 + $0x1], 0 }
   0x2   :  { %10 = vsyncpa [#allocation6], 0 }
   0x3   :  { %12 = vsyncpa [#allocation6 + $0x1], 0 }
   0x4   :  { %13 = vsyncpa [#allocation4], 0 }
   0x5   :  { %15 = vsyncpa [#allocation4 + $0x1], 0  ;;  %s730_s9 = smov 0   ;;  %s732_s10 = smov 0  }
   0x6   :  { %s734_s11 = smov 0   ;;  %s736_s12 = smov 0  }
   0x7   :  { %s738_s13 = smov 0   ;;  %s740_s14 = smov 0  }
   0x8 LB: > { %s475_s15 = sadd.s32 4294967295, %s710_s14   ;;  %s476_s16 = sadd.s32 4294967294, %s710_s14   ;;  %s710_s14 = sphi %s740_s14, %s21_s14   ;;  %s706_s13 = sphi %s738_s13, %s1012_s13   ;;  %s702_s12 = sphi %s736_s12, %s1011_s12   ;;  %s698_s11 = sphi %s734_s11, %s1010_s11   ;;  %s694_s10 = sphi %s732_s10, %s1009_s10   ;;  %s690_s9 = sphi %s730_s9, %s1008_s9  }
   0x9   : > { %s30_s17 = sadd.s32 1, %s706_s13  ;;  %s42_s18 = sadd.s32 1, %s698_s11 }
   0xa   : > { %p31_p0 = scmp.ge.s32.totalorder %s30_s17, 2  ;;  %p49_p1 = scmp.ne.s32.totalorder %s698_s11, %s694_s10 }
   0xb   : > { %p50_p2 = scmp.eq.s32.totalorder %s710_s14, 0  ;;  %p55_p3 = scmp.ne.s32.totalorder %s694_s10, %s690_s9 }
   0xc   : > { %s1014_s17 = smov (%p31_p0, %s30_s17), 0  ;;  %p56_p5 = scmp.eq.s32.totalorder %s475_s15, 0 }
   0xd   : > { %p771_p4 = por %p50_p2, %p49_p1  ;;  %s38_s20 = ssub.s32 %s706_s13, %s1014_s17 }
   0xe   : > { %p107_p6 = scmp.eq.s32.totalorder %s475_s15, 1  ;;  %p40_p7 = scmp.eq.s32.totalorder %s38_s20, 0 }
   0xf   : > { %p777_p8 = por %p56_p5, %p55_p3  ;;  %p113_p10 = scmp.eq.s32.totalorder %s476_s16, 1 }
  0x10   : > { %p781_p9 = por %p107_p6, %p49_p1  ;;  %p514_p13 = scmp.lt.s32.totalorder %s710_s14, 2 }
  0x11   : > { %s996_s21 = scalar_select %p777_p8, 1, 0 }
  0x12   : > { %s997_s22 = scalar_select %p781_p9, 1, 0 }
  0x13   : > { %s786_s23 = scalar_select %p40_p7, %s698_s11, %s42_s18  }
  0x14   : > { %p788_p11 = por %p113_p10, %p55_p3  ;;  %s795_s25 = sand.u32 1, %s698_s11  }
  0x15   : > { %s479_s26 = sshll.u32 %s795_s25, 7  ;;  %s494_s27 = sshll.u32 %s706_s13, 11 }
  0x16   : > { %s998_s24 = scalar_select %p788_p11, 1, 0 }
  0x17   : > { %s802_s30 = scalar_lea.hbm %s990_s0, %s494_s27  ;;  %s137_s3 = scalar_lea.vmem [#allocation2], %s479_s26 }
  0x18   : > { %s147_s4 = sshll.u32 %s137_s3, 4  ;;  %p808_p0 = pnand %p514_p13, %p771_p4  ;;  %s804_s4 = int_to_ptr.vmem [resolvable:$true] %s147_s4 }
  0x19   : > { %s134_s6 = scalar_lea.sflag [#allocation3], %s795_s25  ;;  %s564_s7 = scalar_lea.hbm %s802_s30, 2048 }
  0x1a   : > { %p565_p3 = scmp.ne.s32.totalorder %s802_s30, %s564_s7  ;;  %p566_p5 = pneg %p808_p0 }
  0x1b   : > { %s569_s16 = scalar_lea.hbm %s990_s0, 4096  ;;  %p570_p4 = scmp.lt.u32.totalorder %s802_s30, %s990_s0 }
  0x1c   : > { %p567_p6 = pnand %p566_p5, %p565_p3  ;;  %p571_p10 = scmp.lt.u32.totalorder %s569_s16, %s564_s7 }
  0x1d   : > { %p573_p12 = scmp.lt.u32.totalorder %s564_s7, %s802_s30 }
  0x1e   : > { %p568_p7 = pneg %p567_p6  ;;  %p572_p13 = por %p571_p10, %p570_p4 }
  0x20   : > { %p574_p1 = por %p573_p12, %p572_p13 }
  0x22   : > { %p575_p2 = pnand %p574_p1, %p568_p7 }
  0x24   : > { %578 = shalt.err (!%p575_p2)
}
  0x25   : > { %s579_s20 = scalar_lea.vmem %s804_s4, 2048  ;;  %s712_s26 = smov [#allocation2]  }
  0x26   : > { %p580_p3 = scmp.ne.s32.totalorder %s804_s4, %s579_s20  ;;  %s584_s27 = sshll.u32 %s712_s26, 4  ;;  %s585_s27 = int_to_ptr.vmem [resolvable:$false] %s584_s27 }
  0x27   : > { %s586_s28 = scalar_lea.vmem %s585_s27, 4096  ;;  %p587_p9 = scmp.lt.s32.totalorder %s804_s4, %s585_s27 }
  0x28   : > { %p582_p6 = pnand %p580_p3, %p566_p5  ;;  %p588_p4 = scmp.lt.s32.totalorder %s586_s28, %s579_s20 }
  0x2a   : > { %p583_p11 = pneg %p582_p6  ;;  %p589_p10 = por %p588_p4, %p587_p9 }
  0x2c   : > { %p590_p12 = pnand %p589_p10, %p583_p11 }
  0x2e   : > { %593 = shalt.err (!%p590_p12)
}
  0x2f   : > { %506 = dma.hbm_to_vmem [thread:$0]  (!%p808_p0), %s802_s30, 2048, %s804_s4, %s134_s6  }
  0x30   : > { %p1000_p1 = scmp.lt.s32.totalorder %s710_s14, 3  ;;  %p1001_p2 = scmp.ge.s32.totalorder %s710_s14, 1 }
  0x31   : > { %s482_s3 = sshll.u32 %s795_s25, 4  ;;  %s495_s7 = sshll.u32 %s706_s13, 8 }
  0x32   : > { %p844_p7 = pnand %p1001_p2, %p1000_p1  ;;  %s853_s16 = scalar_lea.hbm %s991_s1, %s495_s7 }
  0x33   : > { %s158_s18 = scalar_lea.vmem [#allocation5], %s482_s3  ;;  %s155_s30 = scalar_lea.sflag [#allocation6], %s795_s25 }
  0x34   : > { %s1002_s29 = scalar_select %p844_p7, 1, 0 }
  0x35   : > { %s166_s19 = sshll.u32 %s158_s18, 4  ;;  %s594_s4 = scalar_lea.hbm %s853_s16, 256  ;;  %s167_s19 = int_to_ptr.vmem [resolvable:$true] %s166_s19 }
  0x36   : > { %p595_p9 = scmp.ne.s32.totalorder %s853_s16, %s594_s4  ;;  %s599_s26 = scalar_lea.hbm %s991_s1, 512 }
  0x37   : > { %p600_p3 = scmp.lt.u32.totalorder %s853_s16, %s991_s1  ;;  %p601_p6 = scmp.lt.u32.totalorder %s599_s26, %s594_s4 }
  0x38   : > { %p597_p11 = pnand %p595_p9, %p566_p5  ;;  %p603_p10 = scmp.lt.u32.totalorder %s594_s4, %s853_s16 }
  0x39   : > { %p602_p4 = por %p601_p6, %p600_p3 }
  0x3a   : > { %p598_p13 = pneg %p597_p11 }
  0x3b   : > { %p604_p12 = por %p603_p10, %p602_p4 }
  0x3d   : > { %p605_p1 = pnand %p604_p12, %p598_p13 }
  0x3f   : > { %608 = shalt.err (!%p605_p1)
}
  0x40   : > { %s609_s25 = scalar_lea.vmem %s167_s19, 256  ;;  %s713_s3 = smov [#allocation5]  }
  0x41   : > { %p610_p2 = scmp.ne.s32.totalorder %s167_s19, %s609_s25  ;;  %s614_s7 = sshll.u32 %s713_s3, 4  ;;  %s615_s7 = int_to_ptr.vmem [resolvable:$false] %s614_s7 }
  0x42   : > { %s616_s8 = scalar_lea.vmem %s615_s7, 512  ;;  %p617_p8 = scmp.lt.s32.totalorder %s167_s19, %s615_s7 }
  0x43   : > { %p612_p9 = pnand %p610_p2, %p566_p5  ;;  %p618_p7 = scmp.lt.s32.totalorder %s616_s8, %s609_s25 }
  0x45   : > { %p613_p11 = pneg %p612_p9  ;;  %p619_p3 = por %p618_p7, %p617_p8 }
  0x47   : > { %p620_p6 = pnand %p619_p3, %p613_p11 }
  0x49   : > { %623 = shalt.err (!%p620_p6)
}
  0x4a   : > { %509 = dma.hbm_to_vmem [thread:$0]  (!%p808_p0), %s853_s16, 256, %s167_s19, %s155_s30  }
  0x4b   : > { %p1003_p13 = scmp.ne.s32.totalorder %s1002_s29, 0 }
  0x4c   : > { %s878_s15 = sand.u32 (!%p1003_p13), 1, %s694_s10   ;;  %p1004_p8 = scmp.ne.s32.totalorder (!%p1003_p13), %s996_s21, 0 }
  0x4d   : > { %175 = sbr.rel (%p1003_p13) target bundleno = 120 (0x78), region = 28  ;;  %s486_s18 = sshll.u32 (!%p1003_p13), %s878_s15, 7 }
  0x4e   : > { %s178_s4 = scalar_lea.sflag (!%p1003_p13), [#allocation3], %s878_s15  ;;  %s884_s6 = scalar_lea.vmem (!%p1003_p13), [#allocation2], %s486_s18 }
  0x54   : > { %677 = dma.done.wait (%p1004_p8), %s178_s4, 2048  }
  0x55   : > { %679 = vsyncadd (%p1004_p8), %s178_s4, 4294965248  ;;  %s487_s5 = sshll.u32 %s878_s15, 4  ;;  %s187_s29 = scalar_lea.sflag [#allocation6], %s878_s15 }
  0x56   : > { %s892_s16 = scalar_lea.vmem [#allocation5], %s487_s5 }
  0x57   : > { %681 = dma.done.wait (%p1004_p8), %s187_s29, 256  }
  0x58   : > { %683 = vsyncadd (%p1004_p8), %s187_s29, 4294967040  ;;  %v239_v0 = vlaneseq  ;;  %v219_v10 = vld [vmem:[%s884_s6] sm:$0xff]  ;;  %v220_v12 = vld [vmem:[%s884_s6 + $0x8] sm:$0xff]  ;;  %s915_s21 = scalar_lea.vmem [#allocation7], %s486_s18  ;;  %s496_s19 = sshll.u32 %s702_s12, 11 }
  0x59   : > { %v235_v11 = vld [vmem:[%s892_s16] sm:$0xff]  ;;  %v222_v17 = vld [vmem:[%s884_s6 + $0x18] sm:$0xff]  ;;  %v224_v21 = vld [vmem:[%s884_s6 + $0x28] sm:$0xff]  ;;  %s368_s30 = sshll.u32 %s915_s21, 4  ;;  %s933_s26 = scalar_lea.hbm %s992_s2, %s496_s19  ;;  %s935_s30 = int_to_ptr.vmem [resolvable:$true] %s368_s30 }
  0x5a   : > { %v240_v1 = vshrl.u32 %v239_v0, 7  ;;  %v221_v15 = vld [vmem:[%s884_s6 + $0x10] sm:$0xff]  ;;  %v223_v19 = vld [vmem:[%s884_s6 + $0x20] sm:$0xff]  ;;  %v226_v25 = vld [vmem:[%s884_s6 + $0x38] sm:$0xff]  ;;  %s352_s27 = scalar_lea.sflag [#allocation4], %s878_s15  ;;  %s624_s28 = scalar_lea.vmem %s935_s30, 2048 }
  0x5b   : > { %v225_v23 = vld [vmem:[%s884_s6 + $0x30] sm:$0xff]  ;;  %v227_v31 = vld [vmem:[%s884_s6 + $0x40] sm:$0xff]  ;;  %v236_v32 = vld [vmem:[%s892_s16 + $0x8] sm:$0xff]  ;;  %p625_p0 = scmp.ne.s32.totalorder %s935_s30, %s624_s28  ;;  %p1005_p5 = scmp.ne.s32.totalorder %s997_s22, 0 }
  0x5c   : > { %v241_v2 = vsub.s32 0, %v240_v1  ;;  %v245_v3 = vsub.s32 1, %v240_v1  ;;  %v249_v4 = vsub.s32 2, %v240_v1  ;;  %v253_v5 = vsub.s32 3, %v240_v1  ;;  %v228_v33 = vld [vmem:[%s884_s6 + $0x48] sm:$0xff]  ;;  %v229_v38 = vld [vmem:[%s884_s6 + $0x50] sm:$0xff] }
  0x5d   : > { %v257_v6 = vsub.s32 4, %v240_v1  ;;  %v261_v7 = vsub.s32 5, %v240_v1  ;;  %v265_v8 = vsub.s32 6, %v240_v1  ;;  %v269_v9 = vsub.s32 7, %v240_v1  ;;  %v230_v39 = vld [vmem:[%s884_s6 + $0x58] sm:$0xff]  ;;  %v231_v40 = vld [vmem:[%s884_s6 + $0x60] sm:$0xff]  ;;  %p626_p7 = pnand %p625_p0, %p1005_p5 }
  0x5e   : > { %v242_v13 = vrot.slane %v235_v11, %v241_v2  ;;  %v246_v14 = vrot.slane %v235_v11, %v245_v3  ;;  %v250_v16 = vrot.slane %v235_v11, %v249_v4  ;;  %v254_v18 = vrot.slane %v235_v11, %v253_v5  ;;  %v232_v45 = vld [vmem:[%s884_s6 + $0x68] sm:$0xff]  ;;  %v233_v46 = vld [vmem:[%s884_s6 + $0x70] sm:$0xff]  ;;  %v234_v47 = vld [vmem:[%s884_s6 + $0x78] sm:$0xff]  ;;  %s714_s25 = smov [#allocation7]  }
  0x5f   : > { %v258_v20 = vrot.slane %v235_v11, %v257_v6  ;;  %v262_v22 = vrot.slane %v235_v11, %v261_v7  ;;  %v266_v24 = vrot.slane %v235_v11, %v265_v8  ;;  %v270_v26 = vrot.slane %v235_v11, %v269_v9  ;;  %p627_p4 = pneg %p626_p7  ;;  %s628_s3 = sshll.u32 %s714_s25, 4  ;;  %s629_s3 = int_to_ptr.vmem [resolvable:$false] %s628_s3 }
  0x60   : > { %v319_v27 = vadd.f32 %v242_v13, %v219_v10  ;;  %v320_v28 = vadd.f32 %v246_v14, %v220_v12  ;;  %v321_v29 = vadd.f32 %v250_v16, %v221_v15  ;;  %v322_v30 = vadd.f32 %v254_v18, %v222_v17  ;;  %s630_s7 = scalar_lea.vmem %s629_s3, 4096  ;;  %p631_p10 = scmp.lt.s32.totalorder %s935_s30, %s629_s3 }
  0x61   : > { %v323_v34 = vadd.f32 %v258_v20, %v223_v19  ;;  %v324_v35 = vadd.f32 %v262_v22, %v224_v21  ;;  %v325_v36 = vadd.f32 %v266_v24, %v225_v23  ;;  %v326_v37 = vadd.f32 %v270_v26, %v226_v25  ;;  %p632_p12 = scmp.lt.s32.totalorder %s630_s7, %s624_s28 }
  0x62   : > { %335 = vst [vmem:[%s915_s21] sm:$0xff] %v319_v27  ;;  %336 = vst [vmem:[%s915_s21 + $0x8] sm:$0xff] %v320_v28  ;;  %v274_v41 = vrot.slane %v236_v32, %v241_v2  ;;  %v278_v42 = vrot.slane %v236_v32, %v245_v3  ;;  %v282_v43 = vrot.slane %v236_v32, %v249_v4 }
  0x63   : > { %337 = vst [vmem:[%s915_s21 + $0x10] sm:$0xff] %v321_v29  ;;  %338 = vst [vmem:[%s915_s21 + $0x18] sm:$0xff] %v322_v30  ;;  %v286_v44 = vrot.slane %v236_v32, %v253_v5  ;;  %v290_v48 = vrot.slane %v236_v32, %v257_v6  ;;  %v294_v49 = vrot.slane %v236_v32, %v261_v7  ;;  %p633_p1 = por %p632_p12, %p631_p10 }
  0x64   : > { %339 = vst [vmem:[%s915_s21 + $0x20] sm:$0xff] %v323_v34  ;;  %340 = vst [vmem:[%s915_s21 + $0x28] sm:$0xff] %v324_v35  ;;  %v298_v50 = vrot.slane %v236_v32, %v265_v8  ;;  %v302_v51 = vrot.slane %v236_v32, %v269_v9  ;;  %v327_v52 = vadd.f32 %v274_v41, %v227_v31 }
  0x65   : > { %341 = vst [vmem:[%s915_s21 + $0x30] sm:$0xff] %v325_v36  ;;  %342 = vst [vmem:[%s915_s21 + $0x38] sm:$0xff] %v326_v37  ;;  %v328_v53 = vadd.f32 %v278_v42, %v228_v33  ;;  %v329_v54 = vadd.f32 %v282_v43, %v229_v38  ;;  %v330_v55 = vadd.f32 %v286_v44, %v230_v39  ;;  %p634_p2 = pnand %p633_p1, %p627_p4 }
  0x66   : > { %v331_v56 = vadd.f32 %v290_v48, %v231_v40  ;;  %v332_v57 = vadd.f32 %v294_v49, %v232_v45  ;;  %v333_v58 = vadd.f32 %v298_v50, %v233_v46  ;;  %v334_v59 = vadd.f32 %v302_v51, %v234_v47  ;;  %343 = vst [vmem:[%s915_s21 + $0x40] sm:$0xff] %v327_v52 }
  0x67   : > { %344 = vst [vmem:[%s915_s21 + $0x48] sm:$0xff] %v328_v53  ;;  %345 = vst [vmem:[%s915_s21 + $0x50] sm:$0xff] %v329_v54 }
  0x68   : > { %346 = vst [vmem:[%s915_s21 + $0x58] sm:$0xff] %v330_v55  ;;  %347 = vst [vmem:[%s915_s21 + $0x60] sm:$0xff] %v331_v56 }
  0x69   : > { %348 = vst [vmem:[%s915_s21 + $0x68] sm:$0xff] %v332_v57  ;;  %349 = vst [vmem:[%s915_s21 + $0x70] sm:$0xff] %v333_v58 }
  0x6a   : > { %350 = vst [vmem:[%s915_s21 + $0x78] sm:$0xff] %v334_v59 }
  0x6b   : > { %637 = shalt.err (!%p634_p2)
}
  0x6c   : > { %s638_s8 = scalar_lea.hbm %s933_s26, 2048  ;;  %s642_s4 = scalar_lea.hbm %s992_s2, 4096 }
  0x6d   : > { %p639_p9 = scmp.ne.s32.totalorder %s933_s26, %s638_s8  ;;  %p643_p6 = scmp.lt.u32.totalorder %s933_s26, %s992_s2 }
  0x6e   : > { %p644_p13 = scmp.lt.u32.totalorder %s642_s4, %s638_s8  ;;  %p646_p0 = scmp.lt.u32.totalorder %s638_s8, %s933_s26 }
  0x6f   : > { %p640_p11 = pnand %p639_p9, %p1005_p5 }
  0x70   : > { %p645_p8 = por %p644_p13, %p643_p6 }
  0x71   : > { %p641_p3 = pneg %p640_p11 }
  0x72   : > { %p647_p7 = por %p646_p0, %p645_p8 }
  0x74   : > { %p648_p4 = pnand %p647_p7, %p641_p3 }
  0x76   : > { %651 = shalt.err (!%p648_p4)
}
  0x77   : > { %501 = dma.vmem_to_hbm [thread:$0]  (%p1005_p5), %s935_s30, 2048, %s933_s26, %s352_s27  }
  0x78 PF: > { %s380_s29 = sand.u32 1, %s690_s9   ;;  %p1006_p10 = scmp.ne.s32.totalorder %s998_s24, 0 }
  0x79   : > { %p1007_p12 = scmp.ge.s32.totalorder %s710_s14, 2  ;;  %s381_s16 = scalar_lea.sflag [#allocation4], %s380_s29 }
  0x7b   : > { %p511_p1 = pnand %p1007_p12, %p1006_p10 }
  0x7d   : > { %685 = dma.done.wait (!%p511_p1), %s381_s16, 2048  }
  0x7e   : > { %687 = vsyncadd (!%p511_p1), %s381_s16, 4294965248  ;;  %s21_s14 = sadd.s32 1, %s710_s14   ;;  %s1008_s9 = smov %s694_s10 }
  0x7f   : > { %p18_p2 = scmp.ge.s32.totalorder %s21_s14, 4   ;;  %s1009_s10 = smov %s698_s11 }
  0x80   : > { %s1010_s11 = smov %s786_s23  ;;  %s1011_s12 = smov %s706_s13 }
  0x81   : > { %s1012_s13 = smov %s1014_s17  ;;  %20 = sbr.rel (!%p18_p2) target bundleno = 8 (0x8), region = 86 }
  0x88   :  { %386 = vsyncpa [#allocation3], 1 }
  0x89   :  { %388 = vsyncpa [#allocation3 + $0x1], 1 }
  0x8a   :  { %389 = vsyncpa [#allocation6], 1 }
  0x8b   :  { %391 = vsyncpa [#allocation6 + $0x1], 1 }
  0x8c   :  { %392 = vsyncpa [#allocation4], 1 }
  0x8d   :  { %394 = vsyncpa [#allocation4 + $0x1], 1 }

</bundles_post_ra>
